<compile_context>
chip_gen: v7x
topology: tpu7x:2x2x1
jax: 0.10.0
libtpu: 0.0.40
codegen_flags: <defaults>
</compile_context>

<pallas_src>
import functools

import numpy as np
import jax
import jax.numpy as jnp
from jax.experimental import pallas as pl
from jax.experimental.pallas import tpu as pltpu


def _deconv_kernel(x_ref, h_ref, w_ref, b_ref, o_ref, *, n_taps, halo):
    # x_ref: (1, C_in, TT)           current time tile (time on lanes)
    # h_ref: (1, 1, C_in, halo)      last `halo` samples preceding this tile (zeros for tile 0)
    # w_ref: (S*C_out, n_taps*C_in)  pre-stacked, weight-normed weight
    # b_ref: (S*C_out, 1)            phase-replicated bias (f32)
    # o_ref: (1, S*C_out, TT)        lane-dense output tile
    x = x_ref[0]                                   # (C_in, TT)
    h = h_ref[0, 0]                                # (C_in, halo)
    TT = x.shape[1]

    # Halo-extended tile; tap shifts are plain static slices (no roll, no masking).
    x_full = jnp.concatenate([h, x], axis=1)       # (C_in, halo + TT)
    x_stk = jnp.concatenate(
        [x_full[:, halo - d: halo - d + TT] for d in range(n_taps)], axis=0
    )                                              # (n_taps*C_in, TT)

    # Single fused MXU matmul over all taps and phases, f32 accumulation.
    y = jnp.dot(w_ref[...], x_stk, preferred_element_type=jnp.float32)
    y = y + b_ref[...]                             # one bias add per tile
    o_ref[0] = y.astype(o_ref.dtype)


def _pick_time_tile(T_in, target=512):
    """Largest time tile <= target that divides T_in (prefer multiples of 128).

    target=512 keeps the per-step VMEM footprint comfortably inside the v7x scoped
    budget; on v6e/v5e a larger target (1024-2048) can be passed via time_tile.
    """
    if T_in <= target:
        return T_in
    for tt in range(target, 127, -1):
        if T_in % tt == 0 and tt % 128 == 0:
            return tt
    for tt in range(target, 127, -1):
        if T_in % tt == 0:
            return tt
    return T_in


def causal_conv_transpose1d(x, w_v, w_g, bias, stride, *, time_tile=None):
    """x: (B, C_in, T_in); w_v: (C_in, C_out, K); w_g: (C_in, 1, 1); bias: (C_out,)."""
    B, C_in, T_in = x.shape
    _, C_out, K = w_v.shape
    S = int(stride)
    assert K > S, "causal deconv requires kernel_size > stride (pad = K - S > 0)"

    n_taps = -(-K // S)            # ceil(K / S)
    halo = n_taps - 1              # >= 1 because K > S

    # weight_norm (dim=0): w = g * v / ||v||, norm over (out_channels, kernel) dims.
    v = w_v.astype(jnp.float32)
    v_norm = jnp.sqrt(jnp.sum(v * v, axis=(1, 2), keepdims=True))
    w_eff = w_g.astype(jnp.float32) * v / v_norm                    # (C_in, C_out, K)

    # Pre-stack weight (glue XLA ops):
    #   W_stk[r*C_out + oc, d*C_in + ic] = w_eff[ic, oc, d*S + r]  (0 if d*S + r >= K)
    w_pad = jnp.pad(w_eff, ((0, 0), (0, 0), (0, n_taps * S - K)))   # (C_in, C_out, n_taps*S)
    w4 = w_pad.reshape(C_in, C_out, n_taps, S)
    w_stk = jnp.transpose(w4, (3, 1, 2, 0)).reshape(S * C_out, n_taps * C_in)
    w_stk = w_stk.astype(x.dtype)   # keep the MXU operand in the activation dtype (bf16-capable)

    # Phase-replicated bias, kept f32 for the accumulator add.
    b_stk = jnp.broadcast_to(bias.astype(jnp.float32)[None, :],
                             (S, C_out)).reshape(S * C_out, 1)

    TT = int(time_tile) if time_tile is not None else _pick_time_tile(T_in)
    assert T_in % TT == 0, (T_in, TT)
    assert halo <= TT
    n_tiles = T_in // TT

    # Per-tile halo: the `halo` input samples preceding each tile (zeros before t=0).
    x_pad = jnp.pad(x, ((0, 0), (0, 0), (halo, 0)))                 # (B, C_in, T_in + halo)
    x_halo = x_pad[:, :, :n_tiles * TT].reshape(B, C_in, n_tiles, TT)[:, :, :, :halo]
    x_halo = jnp.transpose(x_halo, (0, 2, 1, 3))                    # (B, n_tiles, C_in, halo)

    kernel = functools.partial(_deconv_kernel, n_taps=n_taps, halo=halo)

    out = pl.pallas_call(
        kernel,
        out_shape=jax.ShapeDtypeStruct((B, S * C_out, T_in), jnp.float32),
        grid_spec=pltpu.PrefetchScalarGridSpec(
            num_scalar_prefetch=0,
            grid=(B, n_tiles),
            in_specs=[
                pl.BlockSpec((1, C_in, TT), lambda b, t: (b, 0, t)),
                pl.BlockSpec((1, 1, C_in, halo), lambda b, t: (b, t, 0, 0)),
                pl.BlockSpec((S * C_out, n_taps * C_in), lambda b, t: (0, 0)),
                pl.BlockSpec((S * C_out, 1), lambda b, t: (0, 0)),
            ],
            out_specs=pl.BlockSpec((1, S * C_out, TT), lambda b, t: (b, 0, t)),
        ),
        compiler_params=pltpu.CompilerParams(
            dimension_semantics=("parallel", "parallel")),
    )(x, x_halo, w_stk, b_stk)

    # Phase interleave (glue XLA ops): (B, S*C_out, T_in) -> (B, C_out, T_in*S), t = q*S + r.
    y = out.reshape(B, S, C_out, T_in)
    y = jnp.transpose(y, (0, 2, 3, 1)).reshape(B, C_out, T_in * S)
    return y.astype(x.dtype)


def _reference_numpy(x, w_v, w_g, bias, stride):
    """Pure numpy reference of weight_norm ConvTranspose1d + causal slice."""
    x = np.asarray(x, np.float64)
    v = np.asarray(w_v, np.float64)
    g = np.asarray(w_g, np.float64)
    b = np.asarray(bias, np.float64)
    norm = np.sqrt((v ** 2).sum(axis=(1, 2), keepdims=True))
    w = g * v / norm                                       # (C_in, C_out, K)
    B, C_in, T_in = x.shape
    _, C_out, K = w.shape
    S = stride
    T_full = (T_in - 1) * S + K
    y = np.zeros((B, C_out, T_full), np.float64)
    for i in range(T_in):
        for k in range(K):
            y[:, :, i * S + k] += x[:, :, i] @ w[:, :, k]
    y += b[None, :, None]
    pad = K - S
    return y[:, :, :-pad]


if __name__ == "__main__":
    # Module config (small, consistent with CausalConvTranspose1d)
    in_channels, out_channels = 4, 6
    kernel_size, stride = 4, 2
    B, T_in = 2, 16

    key = jax.random.PRNGKey(0)
    k1, k2, k3, k4 = jax.random.split(key, 4)
    x = jax.random.normal(k1, (B, in_channels, T_in), dtype=jnp.float32)
    # weight_norm parameters of nn.ConvTranspose1d: v (C_in, C_out, K), g (C_in, 1, 1), bias (C_out,)
    w_v = 0.01 * jax.random.normal(k2, (in_channels, out_channels, kernel_size), dtype=jnp.float32)
    w_g = 1.0 + 0.1 * jax.random.normal(k3, (in_channels, 1, 1), dtype=jnp.float32)
    bias = 0.01 * jax.random.normal(k4, (out_channels,), dtype=jnp.float32)

    y = causal_conv_transpose1d(x, w_v, w_g, bias, stride)
    y = jax.block_until_ready(y)

    y_ref = _reference_numpy(np.asarray(x), np.asarray(w_v), np.asarray(w_g),
                             np.asarray(bias), stride)
    assert y.shape == (B, out_channels, T_in * stride), y.shape
    np.testing.assert_allclose(np.asarray(y), y_ref, rtol=1e-4, atol=1e-5)

    print("KERNEL_OK")
</pallas_src>

<mosaic_0001>
module attributes {stable_mosaic.version = 11 : i64} {
  func.func @_deconv_kernel(%arg0: i32, %arg1: i32, %arg2: memref<1x4x16xf32, #tpu.memory_space<vmem>>, %arg3: memref<1x1x4x1xf32, #tpu.memory_space<vmem>>, %arg4: memref<12x8xf32, #tpu.memory_space<vmem>>, %arg5: memref<12x1xf32, #tpu.memory_space<vmem>>, %arg6: memref<1x12x16xf32, #tpu.memory_space<vmem>>) attributes {dimension_semantics = [#tpu.dimension_semantics<parallel>, #tpu.dimension_semantics<parallel>], iteration_bounds = array<i64: 2, 1>, scalar_prefetch = 0 : i64, scratch_operands = 0 : i64, tpu.core_type = #tpu.core_type<tc>, window_params = [{transform_indices = @transform_0, window_bounds = array<i64: 1, 4, 16>}, {transform_indices = @transform_1, window_bounds = array<i64: 1, 1, 4, 1>}, {pipeline_mode = #tpu.pipeline_mode<synchronous>, transform_indices = @transform_2, window_bounds = array<i64: 12, 8>}, {pipeline_mode = #tpu.pipeline_mode<synchronous>, transform_indices = @transform_3, window_bounds = array<i64: 12, 1>}, {transform_indices = @transform_4, window_bounds = array<i64: 1, 12, 16>}]} {
    %c0 = arith.constant 0 : index
    %c0_0 = arith.constant 0 : index
    %c0_1 = arith.constant 0 : index
    %0 = vector.load %arg2[%c0, %c0_0, %c0_1] : memref<1x4x16xf32, #tpu.memory_space<vmem>>, vector<1x4x16xf32>
    %1 = vector.shape_cast %0 : vector<1x4x16xf32> to vector<4x16xf32>
    %c0_2 = arith.constant 0 : index
    %c0_3 = arith.constant 0 : index
    %c0_4 = arith.constant 0 : index
    %c0_5 = arith.constant 0 : index
    %2 = vector.load %arg3[%c0_2, %c0_3, %c0_4, %c0_5] : memref<1x1x4x1xf32, #tpu.memory_space<vmem>>, vector<1x1x4x1xf32>
    %3 = vector.shape_cast %2 : vector<1x1x4x1xf32> to vector<4x1xf32>
    %4 = tpu.concatenate %3, %1 in 1 : vector<4x1xf32>, vector<4x16xf32> -> vector<4x17xf32>
    %5 = vector.extract_strided_slice %4 {offsets = [0, 1], sizes = [4, 16], strides = [1, 1]} : vector<4x17xf32> to vector<4x16xf32>
    %6 = vector.extract_strided_slice %4 {offsets = [0, 0], sizes = [4, 16], strides = [1, 1]} : vector<4x17xf32> to vector<4x16xf32>
    %7 = tpu.concatenate %5, %6 in 0 : vector<4x16xf32>, vector<4x16xf32> -> vector<8x16xf32>
    %c0_6 = arith.constant 0 : index
    %c0_7 = arith.constant 0 : index
    %8 = vector.load %arg4[%c0_6, %c0_7] : memref<12x8xf32, #tpu.memory_space<vmem>>, vector<12x8xf32>
    %cst = arith.constant dense<0.000000e+00> : vector<12x16xf32>
    %9 = tpu.matmul %8, %7, %cst {dimension_numbers = #tpu.dot_dimension_numbers<[1], [0], [0], [1], [0, 0, 1, 1], [], []>} : vector<12x8xf32>, vector<8x16xf32>, vector<12x16xf32> -> vector<12x16xf32>
    %c0_8 = arith.constant 0 : index
    %c0_9 = arith.constant 0 : index
    %10 = vector.load %arg5[%c0_8, %c0_9] : memref<12x1xf32, #tpu.memory_space<vmem>>, vector<12x1xf32>
    %11 = vector.broadcast %10 : vector<12x1xf32> to vector<12x16xf32>
    %12 = arith.addf %9, %11 : vector<12x16xf32>
    %c0_10 = arith.constant 0 : index
    %c0_11 = arith.constant 0 : index
    %c0_12 = arith.constant 0 : index
    %13 = vector.load %arg6[%c0_10, %c0_11, %c0_12] : memref<1x12x16xf32, #tpu.memory_space<vmem>>, vector<1x12x16xf32>
    %14 = vector.shape_cast %13 : vector<1x12x16xf32> to vector<12x16xf32>
    %15 = vector.shape_cast %12 : vector<12x16xf32> to vector<1x12x16xf32>
    tpu.vector_store %arg6[%c0_10, %c0_11, %c0_12], %15 {strides = array<i32>} : memref<1x12x16xf32, #tpu.memory_space<vmem>>, vector<1x12x16xf32>,
    return
  }
  func.func @transform_0(%arg0: i32, %arg1: i32) -> (i32, i32, i32) {
    %c0_i32 = arith.constant 0 : i32
    %c0_i32_0 = arith.constant 0 : i32
    return %arg0, %c0_i32, %arg1 : i32, i32, i32
  }
  func.func @transform_1(%arg0: i32, %arg1: i32) -> (i32, i32, i32, i32) {
    %c0_i32 = arith.constant 0 : i32
    %c0_i32_0 = arith.constant 0 : i32
    %c0_i32_1 = arith.constant 0 : i32
    return %arg0, %arg1, %c0_i32, %c0_i32_0 : i32, i32, i32, i32
  }
  func.func @transform_2(%arg0: i32, %arg1: i32) -> (i32, i32) {
    %c0_i32 = arith.constant 0 : i32
    %c0_i32_0 = arith.constant 0 : i32
    %c0_i32_1 = arith.constant 0 : i32
    return %c0_i32, %c0_i32_0 : i32, i32
  }
  func.func @transform_3(%arg0: i32, %arg1: i32) -> (i32, i32) {
    %c0_i32 = arith.constant 0 : i32
    %c0_i32_0 = arith.constant 0 : i32
    %c0_i32_1 = arith.constant 0 : i32
    return %c0_i32, %c0_i32_0 : i32, i32
  }
  func.func @transform_4(%arg0: i32, %arg1: i32) -> (i32, i32, i32) {
    %c0_i32 = arith.constant 0 : i32
    %c0_i32_0 = arith.constant 0 : i32
    return %arg0, %c0_i32, %arg1 : i32, i32, i32
  }
}

</mosaic_0001>

<bundles_post_ra>
// kernel: tpu_custom_call.1
= control target key start
LH: loop header
LB: loop body
LE: loop exit
PB: predicated region body
PF: predicated region fallthrough
CT: control target
= control target key end

     0   :  { %s571_s15 = smov 0   ;;  %s573_s16 = smov 0   ;;  %s625_s0 = inlined_call_operand.vmem [shape: f32[2,4,16], index: 0, kind: input, shape index: {}]   ;;  %s626_s1 = inlined_call_operand.vmem [shape: f32[2,1,4,1], index: 1, kind: input, shape index: {}]   ;;  %s627_s2 = inlined_call_operand.vmem [shape: f32[12,8], index: 2, kind: input, shape index: {}]   ;;  %s628_s3 = inlined_call_operand.vmem [shape: f32[12,1], index: 3, kind: input, shape index: {}]   ;;  %s629_s4 = inlined_call_operand.vmem [shape: f32[2,12,16], index: 4, kind: output, shape index: {}]  }
   0x1   :  { %s575_s17 = smov 0  }
   0x2 LB: > { %s26_s18 = sadd.s32 1, %s537_s16  ;;  %p472_p0 = scmp.ge.s32.totalorder %s541_s17, 1  ;;  %s541_s17 = sphi %s575_s17, %s14_s17   ;;  %s537_s16 = sphi %s573_s16, %s631_s16   ;;  %s533_s15 = sphi %s571_s15, %s630_s15  }
   0x3   : > { %p28_p1 = scmp.ge.s32.totalorder %s26_s18, 2  ;;  %p194_p2 = scmp.lt.s32.totalorder %s541_s17, 3 }
   0x5   : > { %s633_s18 = smov (%p28_p1, %s26_s18), 0  ;;  %p195_p3 = pnand %p472_p0, %p194_p2 }
   0x6   : > { %p232_p4 = scmp.lt.s32.totalorder (!%p195_p3), %s533_s15, 1  ;;  %s543_s23 = smov (!%p195_p3), 1   ;;  %vm260_vm0 = vcmask (!%p195_p3), 7168   ;;  %v269_v5 = vld [vmem:[%s627_s2] sm:$0xff] (!%p195_p3)  ;;  %vm287_vm1 = vcmask (!%p195_p3), 64512   ;;  %v544_v7 = vmov (!%p195_p3), 0  }
   0x7   : > { %198 = sbr.rel (%p195_p3) target bundleno = 585 (0x249), region = 36  ;;  %487 = vmatprep.mubr.msk.f32.mxu0 (!%p195_p3), %vm287_vm1, %v269_v5  ;;  %v272_v6 = vld [vmem:[%s628_s3 + $0x8] sm:$0xf] (!%p195_p3)  ;;  %518 = vset.pattern.permute.xlu0 (!%p195_p3), %v544_v7  ;;  %vm267_vm2 = vcmask (!%p195_p3), 1043456   ;;  %s545_s5 = smov (!%p195_p3), 127   ;;  %v271_v10 = vld [vmem:[%s628_s3] sm:$0xff] (!%p195_p3) }
   0x8   : > { %517 = vset.pattern.permute.xlu1 (!%p195_p3), %v544_v7  ;;  %v270_v12 = vld [vmem:[%s627_s2 + $0x8] sm:$0xf] (!%p195_p3)  ;;  %vm371_vm3 = vcmask (!%p195_p3), 125952   ;;  %vm369_vm4 = vcmask (!%p195_p3), 130048  }
   0xe   : > { %s635_s15 = smov (!%p232_p4, %s533_s15), 1 }
   0xf   : > { %s473_s19 = sshll.u32 %s635_s15, 2  ;;  %s481_s10 = sshll.u32 %s635_s15, 4 }
  0x10   : > { %s238_s22 = scalar_lea.vmem %s625_s0, %s473_s19  ;;  %s245_s26 = scalar_lea.vmem %s626_s1, %s473_s19 }
  0x11   : > { %v254_v0 = vld [vmem:[%s238_s22] sm:$0xf]  ;;  %s253_s13 = scalar_lea.vmem %s629_s4, %s481_s10 }
  0x12   : > { %257 = vrot.lane.b32.xlu0 %v254_v0, %s543_s23  ;;  %v255_v1 = vld [vmem:[%s245_s26] sm:$0xf] }
  0x84   : > { %v258_v2 = vpop.permute.xlu0 %257 }
  0x85   : > { %v261_v3 = vsel %vm260_vm0, %v255_v1, %v258_v2 }
  0x86   : > { %v263_v4 = vrot.slane %v261_v3, 4 }
  0x88   : > { %264 = vrot.lane.b32.xlu0 %v263_v4, %s543_s23 }
  0x8c   : > { %280 = vperm.xlu0 %518, %v272_v6  }
  0xfa   : > { %v265_v8 = vpop.permute.xlu0 %264 }
  0xfb   : > { %v268_v9 = vsel %vm267_vm2, %v261_v3, %v265_v8 }
  0xfc   : > { %284 = vrot.lane.b32.xlu1 %v268_v9, %s545_s5 }
 0x100   : > { %275 = vperm.xlu1 %517, %v271_v10  }
 0x10b   : > { %v281_v13 = vpop.permute.xlu0 %280 }
 0x16e   : > { %v285_v11 = vpop.permute.xlu1 %284 }
 0x16f   : > { %485 = vmatprep.subr.mxu0 %v285_v11 }
 0x170   : > { %486 = vmatpush3.msra.mxu0 %v285_v11 }
 0x171   : > { %488 = vmatmul.mubr.msk.f32.vlgmr.msra.gmra.mrb[0].mxu0 %vm287_vm1, %v270_v12 }
 0x17f   : > { %v276_v14 = vpop.permute.xlu1 %275 }
 0x244   : > { %v489_v15 = vpop.f32.mrb[0].mxu0 }
 0x245   : > { %v366_v16 = vadd.f32 %v489_v15, %v281_v13  ;;  %v360_v17 = vpop.f32.mrb[1].mxu0 }
 0x246   : > { %v361_v18 = vadd.f32 %v360_v17, %v276_v14 }
 0x247   : > { %372 = vst.msk [vmem:[%s253_s13 + $0x8] sm:$0xf] %vm371_vm3, %v366_v16 }
 0x248   : > { %370 = vst.msk [vmem:[%s253_s13] sm:$0xff] %vm369_vm4, %v361_v18 }
 0x249 PF: > { %s14_s17 = sadd.s32 1, %s541_s17   ;;  %s630_s15 = smov %s537_s16 }
 0x24a   : > { %p11_p5 = scmp.ge.s32.totalorder %s14_s17, 4   ;;  %s631_s16 = smov %s633_s18 }
 0x24c   :  { %13 = sbr.rel (!%p11_p5) target bundleno = 2 (0x2), region = 69 }

</bundles_post_ra>
